<compile_context>
chip_gen: v5e
topology: v5e:2x2
jax: 0.10.0
libtpu: 0.0.40
codegen_flags: <defaults>
</compile_context>

<pallas_src>
import functools

import jax
import jax.numpy as jnp
from jax import lax
from jax.experimental import pallas as pl
from jax.experimental.pallas import tpu as pltpu


def _attention_kernel(x_ref, wqkv_ref, wproj_ref, bias_ref, o_ref, acc_ref, *,
                      group_heads: int, head_dim: int):
    """One grid step = (batch row b, head group g).

    x_ref:     (1, N, C)    input block (resident across g; index map ignores g)
    wqkv_ref:  (1, C, 3*gc) bf16 qkv-weight slice for this group
                            (columns = [q | k | v] of the group's heads; q pre-scaled)
    wproj_ref: (gc, C)      bf16 proj-weight rows for this group's channels
    bias_ref:  (1, C)       f32 proj bias
    o_ref:     (1, N, C)    output block (resident across g)
    acc_ref:   (N, C)       f32 projection accumulator scratch
    """
    g = pl.program_id(1)
    gc = group_heads * head_dim

    # Initialize the projection accumulator with the bias at the first group.
    @pl.when(g == 0)
    def _():
        acc_ref[...] = jnp.broadcast_to(bias_ref[...], acc_ref.shape)

    xb = x_ref[0].astype(jnp.bfloat16)                        # (N, C)
    w_qkv_g = wqkv_ref[0]                                     # (C, 3*gc) bf16

    # Per-group QKV projection; cast to bf16 immediately so only a bf16
    # (N, 3*gc) slice stays live (instead of a full (N, 3C) f32 tensor).
    qkv = jnp.dot(xb, w_qkv_g,
                  preferred_element_type=jnp.float32).astype(jnp.bfloat16)

    outs = []
    for j in range(group_heads):
        q = qkv[:, 0 * gc + j * head_dim: 0 * gc + (j + 1) * head_dim]   # (N, hd)
        k = qkv[:, 1 * gc + j * head_dim: 1 * gc + (j + 1) * head_dim]   # (N, hd)
        v = qkv[:, 2 * gc + j * head_dim: 2 * gc + (j + 1) * head_dim]   # (N, hd)

        # S = (q * scale) @ K^T; scale was folded into the q weight columns and
        # the contraction is over the last dim of both operands (no K transpose).
        s = lax.dot_general(q, k, (((1,), (1,)), ((), ())),
                            preferred_element_type=jnp.float32)          # (N, N)
        s_max = jnp.max(s, axis=-1, keepdims=True)
        # bf16 exponent: ~2x EUP throughput on v6e/v7x and halves the live
        # (N, N) probs; on v5e (no bf16 EUP) it just adds a cheap cast.
        p = jnp.exp((s - s_max).astype(jnp.bfloat16))                    # (N, N) bf16
        denom = jnp.sum(p, axis=-1, keepdims=True, dtype=jnp.float32)    # (N, 1) f32

        # Deferred softmax normalization on the small (N, hd) PV product.
        o_h = jnp.dot(p, v, preferred_element_type=jnp.float32)          # (N, hd)
        outs.append(o_h * pl.reciprocal(denom, approx=True))

    # Lane-dense (N, gc) group output, consumed directly as a bf16 MXU operand
    # (no f32 slab, no partial-lane stores).
    o_group = outs[0] if group_heads == 1 else jnp.concatenate(outs, axis=-1)
    o_group = o_group.astype(jnp.bfloat16)                               # (N, gc)

    # Partial output projection for this group's channels.
    acc_ref[...] += jnp.dot(o_group, wproj_ref[...],
                            preferred_element_type=jnp.float32)

    @pl.when(g == pl.num_programs(1) - 1)
    def _():
        o_ref[0] = acc_ref[...].astype(o_ref.dtype)


def _derive_vmem_limit_bytes(N, C, gc, x_itemsize):
    """Shape-derived scoped-VMEM limit, capped by the chip's physical VMEM."""
    blk_x = 2 * N * C * x_itemsize            # x block, double-buffered
    blk_out = 2 * N * C * x_itemsize          # out block, double-buffered
    blk_wqkv = 2 * C * 3 * gc * 2             # per-group qkv weight slice (bf16)
    blk_wproj = 2 * gc * C * 2                # per-group proj rows (bf16)
    acc = N * C * 4                           # f32 accumulator scratch
    work = N * 3 * gc * 2 + N * N * 4 + N * N * 2 + N * gc * 4
    need = blk_x + blk_out + blk_wqkv + blk_wproj + acc + work + (8 << 20)
    cap = 96 << 20                            # conservative for 128 MiB parts
    try:
        cap = min(cap, int(pltpu.get_tpu_info().vmem_capacity_bytes) * 3 // 4)
    except Exception:  # pragma: no cover - info query is best-effort
        pass
    return int(max(32 << 20, min(need, cap)))


def attention_pallas(x, w_qkv, w_proj, b_proj, *, num_heads: int):
    """x: (B, N, C). w_qkv: (3C, C), w_proj: (C, C), b_proj: (C,). Returns (B, N, C)."""
    B, N, C = x.shape
    assert C % num_heads == 0
    head_dim = C // num_heads
    scale = head_dim ** -0.5

    # Widest lane-dense head group (group_channels == 128 for hd in {32, 64, 128}).
    gh = max(1, min(num_heads, max(1, 128 // head_dim)))
    while num_heads % gh:
        gh -= 1
    num_groups = num_heads // gh
    gc = gh * head_dim

    # Wrapper-side weight prep (one-time, batch-independent):
    #   * fold the softmax scale into the Q rows,
    #   * regroup the qkv weight per head group with per-group [q | k | v]
    #     column blocks, pre-transposed, cast to bf16.
    w = w_qkv.astype(jnp.float32)
    wq = (w[:C] * scale).reshape(num_groups, gc, C)
    wk = w[C:2 * C].reshape(num_groups, gc, C)
    wv = w[2 * C:].reshape(num_groups, gc, C)
    w_qkv_g = jnp.transpose(jnp.concatenate([wq, wk, wv], axis=1),
                            (0, 2, 1)).astype(jnp.bfloat16)   # (G, C, 3*gc)
    w_proj_t = jnp.asarray(w_proj.T, dtype=jnp.bfloat16)      # (C, C)
    b_proj_2d = b_proj.reshape(1, C).astype(jnp.float32)

    kernel = functools.partial(_attention_kernel,
                               group_heads=gh, head_dim=head_dim)
    vmem_limit = _derive_vmem_limit_bytes(N, C, gc, x.dtype.itemsize)

    return pl.pallas_call(
        kernel,
        out_shape=jax.ShapeDtypeStruct((B, N, C), x.dtype),
        grid_spec=pltpu.PrefetchScalarGridSpec(
            num_scalar_prefetch=0,
            grid=(B, num_groups),
            in_specs=[
                pl.BlockSpec((1, N, C), lambda b, g: (b, 0, 0)),        # x
                pl.BlockSpec((1, C, 3 * gc), lambda b, g: (g, 0, 0)),   # qkv weight slice
                pl.BlockSpec((gc, C), lambda b, g: (g, 0)),             # proj weight rows
                pl.BlockSpec((1, C), lambda b, g: (0, 0)),              # proj bias
            ],
            out_specs=pl.BlockSpec((1, N, C), lambda b, g: (b, 0, 0)),
            scratch_shapes=[pltpu.VMEM((N, C), jnp.float32)],           # proj accumulator
        ),
        compiler_params=pltpu.CompilerParams(
            dimension_semantics=("parallel", "arbitrary"),
            vmem_limit_bytes=vmem_limit),
    )(x, w_qkv_g, w_proj_t, b_proj_2d)


def attention_ref(x, w_qkv, w_proj, b_proj, *, num_heads: int):
    """Pure-JAX f32 reference mirroring the PyTorch forward (eval mode)."""
    B, N, C = x.shape
    head_dim = C // num_heads
    scale = head_dim ** -0.5
    qkv = jnp.einsum('bnc,oc->bno', x, w_qkv)              # (B, N, 3C)
    qkv = qkv.reshape(B, N, 3, num_heads, head_dim).transpose(2, 0, 3, 1, 4)
    q, k, v = qkv[0], qkv[1], qkv[2]                       # (B, H, N, hd)
    attn = jnp.einsum('bhqd,bhkd->bhqk', q * scale, k)
    attn = jax.nn.softmax(attn, axis=-1)
    o = jnp.einsum('bhqk,bhkd->bhqd', attn, v)             # (B, H, N, hd)
    o = o.transpose(0, 2, 1, 3).reshape(B, N, C)
    return jnp.einsum('bnc,oc->bno', o, w_proj) + b_proj


if __name__ == "__main__":
    # Small but lane-dense shapes: B=2, N=16 tokens, C=128 channels,
    # num_heads=4 -> head_dim=32 -> one head group of 4 heads (gc=128).
    B, N, C = 2, 16, 128
    num_heads = 4

    key = jax.random.PRNGKey(0)
    kx, kq, kp, kb = jax.random.split(key, 4)
    x = jax.random.normal(kx, (B, N, C), dtype=jnp.float32)
    w_qkv = jax.random.normal(kq, (3 * C, C), dtype=jnp.float32) * 0.05
    w_proj = jax.random.normal(kp, (C, C), dtype=jnp.float32) * 0.05
    b_proj = jax.random.normal(kb, (C,), dtype=jnp.float32) * 0.01

    out = attention_pallas(x, w_qkv, w_proj, b_proj, num_heads=num_heads)
    out = jax.block_until_ready(out)

    ref = attention_ref(x, w_qkv, w_proj, b_proj, num_heads=num_heads)
    assert out.shape == (B, N, C)
    # bf16 MXU operands, bf16 softmax exponent and approx reciprocal vs f32
    # reference -> loosened tolerance.
    assert jnp.allclose(out, ref, atol=3e-2, rtol=3e-2), "mismatch vs reference"

    print("KERNEL_OK")
</pallas_src>

<mosaic_0001>
module attributes {stable_mosaic.version = 11 : i64} {
  func.func @_attention_kernel(%arg0: i32, %arg1: i32, %arg2: memref<1x16x128xf32, #tpu.memory_space<vmem>>, %arg3: memref<1x128x384xbf16, #tpu.memory_space<vmem>>, %arg4: memref<128x128xbf16, #tpu.memory_space<vmem>>, %arg5: memref<1x128xf32, #tpu.memory_space<vmem>>, %arg6: memref<1x16x128xf32, #tpu.memory_space<vmem>>, %arg7: memref<16x128xf32, #tpu.memory_space<vmem>>) attributes {dimension_semantics = [#tpu.dimension_semantics<parallel>, #tpu.dimension_semantics<arbitrary>], iteration_bounds = array<i64: 2, 1>, scalar_prefetch = 0 : i64, scratch_operands = 1 : i64, tpu.core_type = #tpu.core_type<tc>, window_params = [{transform_indices = @transform_0, window_bounds = array<i64: 1, 16, 128>}, {transform_indices = @transform_1, window_bounds = array<i64: 1, 128, 384>}, {transform_indices = @transform_2, window_bounds = array<i64: 128, 128>}, {pipeline_mode = #tpu.pipeline_mode<synchronous>, transform_indices = @transform_3, window_bounds = array<i64: 1, 128>}, {transform_indices = @transform_4, window_bounds = array<i64: 1, 16, 128>}]} {
    %c0_i32 = arith.constant 0 : i32
    %0 = arith.cmpi eq, %arg1, %c0_i32 : i32
    %1 = arith.extui %0 : i1 to i32
    %c0_i32_0 = arith.constant 0 : i32
    %2 = arith.cmpi ne, %1, %c0_i32_0 : i32
    scf.if %2 {
      %c0_31 = arith.constant 0 : index
      %c0_32 = arith.constant 0 : index
      %88 = vector.load %arg5[%c0_31, %c0_32] : memref<1x128xf32, #tpu.memory_space<vmem>>, vector<1x128xf32>
      %89 = vector.shape_cast %88 : vector<1x128xf32> to vector<1x128xf32>
      %90 = vector.broadcast %89 : vector<1x128xf32> to vector<16x128xf32>
      %c0_33 = arith.constant 0 : index
      %c0_34 = arith.constant 0 : index
      %91 = vector.load %arg7[%c0_33, %c0_34] : memref<16x128xf32, #tpu.memory_space<vmem>>, vector<16x128xf32>
      tpu.vector_store %arg7[%c0_33, %c0_34], %90 {strides = array<i32>} : memref<16x128xf32, #tpu.memory_space<vmem>>, vector<16x128xf32>,
    } else {
    }
    %c0 = arith.constant 0 : index
    %c0_1 = arith.constant 0 : index
    %c0_2 = arith.constant 0 : index
    %3 = vector.load %arg2[%c0, %c0_1, %c0_2] : memref<1x16x128xf32, #tpu.memory_space<vmem>>, vector<1x16x128xf32>
    %4 = vector.shape_cast %3 : vector<1x16x128xf32> to vector<16x128xf32>
    %5 = arith.truncf %4 : vector<16x128xf32> to vector<16x128xbf16>
    %c0_3 = arith.constant 0 : index
    %c0_4 = arith.constant 0 : index
    %c0_5 = arith.constant 0 : index
    %6 = vector.load %arg3[%c0_3, %c0_4, %c0_5] : memref<1x128x384xbf16, #tpu.memory_space<vmem>>, vector<1x128x384xbf16>
    %7 = vector.shape_cast %6 : vector<1x128x384xbf16> to vector<128x384xbf16>
    %cst = arith.constant dense<0.000000e+00> : vector<16x384xf32>
    %8 = tpu.matmul %5, %7, %cst {dimension_numbers = #tpu.dot_dimension_numbers<[1], [0], [0], [1], [0, 0, 1, 1], [], []>} : vector<16x128xbf16>, vector<128x384xbf16>, vector<16x384xf32> -> vector<16x384xf32>
    %9 = arith.truncf %8 : vector<16x384xf32> to vector<16x384xbf16>
    %10 = vector.extract_strided_slice %9 {offsets = [0, 0], sizes = [16, 32], strides = [1, 1]} : vector<16x384xbf16> to vector<16x32xbf16>
    %11 = vector.extract_strided_slice %9 {offsets = [0, 128], sizes = [16, 32], strides = [1, 1]} : vector<16x384xbf16> to vector<16x32xbf16>
    %12 = vector.extract_strided_slice %9 {offsets = [0, 256], sizes = [16, 32], strides = [1, 1]} : vector<16x384xbf16> to vector<16x32xbf16>
    %cst_6 = arith.constant dense<0.000000e+00> : vector<16x16xf32>
    %13 = tpu.matmul %10, %11, %cst_6 {dimension_numbers = #tpu.dot_dimension_numbers<[1], [1], [0], [0], [0, 0, 1, 0], [], []>} : vector<16x32xbf16>, vector<16x32xbf16>, vector<16x16xf32> -> vector<16x16xf32>
    %cst_7 = arith.constant dense<0xFF800000> : vector<16xf32>
    %14 = vector.multi_reduction <maximumf>, %13, %cst_7 [1] : vector<16x16xf32> to vector<16xf32>
    %15 = vector.shape_cast %14 : vector<16xf32> to vector<16x1xf32>
    %16 = vector.broadcast %15 : vector<16x1xf32> to vector<16x16xf32>
    %17 = arith.subf %13, %16 : vector<16x16xf32>
    %18 = arith.truncf %17 : vector<16x16xf32> to vector<16x16xbf16>
    %19 = math.exp %18 : vector<16x16xbf16>
    %20 = arith.extf %19 : vector<16x16xbf16> to vector<16x16xf32>
    %cst_8 = arith.constant dense<0.000000e+00> : vector<16xf32>
    %21 = vector.multi_reduction <add>, %20, %cst_8 [1] : vector<16x16xf32> to vector<16xf32>
    %22 = vector.shape_cast %21 : vector<16xf32> to vector<16x1xf32>
    %cst_9 = arith.constant dense<0.000000e+00> : vector<16x32xf32>
    %23 = tpu.matmul %19, %12, %cst_9 {dimension_numbers = #tpu.dot_dimension_numbers<[1], [0], [0], [1], [0, 0, 1, 1], [], []>} : vector<16x16xbf16>, vector<16x32xbf16>, vector<16x32xf32> -> vector<16x32xf32>
    %24 = tpu.reciprocal %22 {approx = true} : vector<16x1xf32> -> vector<16x1xf32>
    %25 = vector.broadcast %24 : vector<16x1xf32> to vector<16x32xf32>
    %26 = arith.mulf %23, %25 : vector<16x32xf32>
    %27 = vector.extract_strided_slice %9 {offsets = [0, 32], sizes = [16, 32], strides = [1, 1]} : vector<16x384xbf16> to vector<16x32xbf16>
    %28 = vector.extract_strided_slice %9 {offsets = [0, 160], sizes = [16, 32], strides = [1, 1]} : vector<16x384xbf16> to vector<16x32xbf16>
    %29 = vector.extract_strided_slice %9 {offsets = [0, 288], sizes = [16, 32], strides = [1, 1]} : vector<16x384xbf16> to vector<16x32xbf16>
    %cst_10 = arith.constant dense<0.000000e+00> : vector<16x16xf32>
    %30 = tpu.matmul %27, %28, %cst_10 {dimension_numbers = #tpu.dot_dimension_numbers<[1], [1], [0], [0], [0, 0, 1, 0], [], []>} : vector<16x32xbf16>, vector<16x32xbf16>, vector<16x16xf32> -> vector<16x16xf32>
    %cst_11 = arith.constant dense<0xFF800000> : vector<16xf32>
    %31 = vector.multi_reduction <maximumf>, %30, %cst_11 [1] : vector<16x16xf32> to vector<16xf32>
    %32 = vector.shape_cast %31 : vector<16xf32> to vector<16x1xf32>
    %33 = vector.broadcast %32 : vector<16x1xf32> to vector<16x16xf32>
    %34 = arith.subf %30, %33 : vector<16x16xf32>
    %35 = arith.truncf %34 : vector<16x16xf32> to vector<16x16xbf16>
    %36 = math.exp %35 : vector<16x16xbf16>
    %37 = arith.extf %36 : vector<16x16xbf16> to vector<16x16xf32>
    %cst_12 = arith.constant dense<0.000000e+00> : vector<16xf32>
    %38 = vector.multi_reduction <add>, %37, %cst_12 [1] : vector<16x16xf32> to vector<16xf32>
    %39 = vector.shape_cast %38 : vector<16xf32> to vector<16x1xf32>
    %cst_13 = arith.constant dense<0.000000e+00> : vector<16x32xf32>
    %40 = tpu.matmul %36, %29, %cst_13 {dimension_numbers = #tpu.dot_dimension_numbers<[1], [0], [0], [1], [0, 0, 1, 1], [], []>} : vector<16x16xbf16>, vector<16x32xbf16>, vector<16x32xf32> -> vector<16x32xf32>
    %41 = tpu.reciprocal %39 {approx = true} : vector<16x1xf32> -> vector<16x1xf32>
    %42 = vector.broadcast %41 : vector<16x1xf32> to vector<16x32xf32>
    %43 = arith.mulf %40, %42 : vector<16x32xf32>
    %44 = vector.extract_strided_slice %9 {offsets = [0, 64], sizes = [16, 32], strides = [1, 1]} : vector<16x384xbf16> to vector<16x32xbf16>
    %45 = vector.extract_strided_slice %9 {offsets = [0, 192], sizes = [16, 32], strides = [1, 1]} : vector<16x384xbf16> to vector<16x32xbf16>
    %46 = vector.extract_strided_slice %9 {offsets = [0, 320], sizes = [16, 32], strides = [1, 1]} : vector<16x384xbf16> to vector<16x32xbf16>
    %cst_14 = arith.constant dense<0.000000e+00> : vector<16x16xf32>
    %47 = tpu.matmul %44, %45, %cst_14 {dimension_numbers = #tpu.dot_dimension_numbers<[1], [1], [0], [0], [0, 0, 1, 0], [], []>} : vector<16x32xbf16>, vector<16x32xbf16>, vector<16x16xf32> -> vector<16x16xf32>
    %cst_15 = arith.constant dense<0xFF800000> : vector<16xf32>
    %48 = vector.multi_reduction <maximumf>, %47, %cst_15 [1] : vector<16x16xf32> to vector<16xf32>
    %49 = vector.shape_cast %48 : vector<16xf32> to vector<16x1xf32>
    %50 = vector.broadcast %49 : vector<16x1xf32> to vector<16x16xf32>
    %51 = arith.subf %47, %50 : vector<16x16xf32>
    %52 = arith.truncf %51 : vector<16x16xf32> to vector<16x16xbf16>
    %53 = math.exp %52 : vector<16x16xbf16>
    %54 = arith.extf %53 : vector<16x16xbf16> to vector<16x16xf32>
    %cst_16 = arith.constant dense<0.000000e+00> : vector<16xf32>
    %55 = vector.multi_reduction <add>, %54, %cst_16 [1] : vector<16x16xf32> to vector<16xf32>
    %56 = vector.shape_cast %55 : vector<16xf32> to vector<16x1xf32>
    %cst_17 = arith.constant dense<0.000000e+00> : vector<16x32xf32>
    %57 = tpu.matmul %53, %46, %cst_17 {dimension_numbers = #tpu.dot_dimension_numbers<[1], [0], [0], [1], [0, 0, 1, 1], [], []>} : vector<16x16xbf16>, vector<16x32xbf16>, vector<16x32xf32> -> vector<16x32xf32>
    %58 = tpu.reciprocal %56 {approx = true} : vector<16x1xf32> -> vector<16x1xf32>
    %59 = vector.broadcast %58 : vector<16x1xf32> to vector<16x32xf32>
    %60 = arith.mulf %57, %59 : vector<16x32xf32>
    %61 = vector.extract_strided_slice %9 {offsets = [0, 96], sizes = [16, 32], strides = [1, 1]} : vector<16x384xbf16> to vector<16x32xbf16>
    %62 = vector.extract_strided_slice %9 {offsets = [0, 224], sizes = [16, 32], strides = [1, 1]} : vector<16x384xbf16> to vector<16x32xbf16>
    %63 = vector.extract_strided_slice %9 {offsets = [0, 352], sizes = [16, 32], strides = [1, 1]} : vector<16x384xbf16> to vector<16x32xbf16>
    %cst_18 = arith.constant dense<0.000000e+00> : vector<16x16xf32>
    %64 = tpu.matmul %61, %62, %cst_18 {dimension_numbers = #tpu.dot_dimension_numbers<[1], [1], [0], [0], [0, 0, 1, 0], [], []>} : vector<16x32xbf16>, vector<16x32xbf16>, vector<16x16xf32> -> vector<16x16xf32>
    %cst_19 = arith.constant dense<0xFF800000> : vector<16xf32>
    %65 = vector.multi_reduction <maximumf>, %64, %cst_19 [1] : vector<16x16xf32> to vector<16xf32>
    %66 = vector.shape_cast %65 : vector<16xf32> to vector<16x1xf32>
    %67 = vector.broadcast %66 : vector<16x1xf32> to vector<16x16xf32>
    %68 = arith.subf %64, %67 : vector<16x16xf32>
    %69 = arith.truncf %68 : vector<16x16xf32> to vector<16x16xbf16>
    %70 = math.exp %69 : vector<16x16xbf16>
    %71 = arith.extf %70 : vector<16x16xbf16> to vector<16x16xf32>
    %cst_20 = arith.constant dense<0.000000e+00> : vector<16xf32>
    %72 = vector.multi_reduction <add>, %71, %cst_20 [1] : vector<16x16xf32> to vector<16xf32>
    %73 = vector.shape_cast %72 : vector<16xf32> to vector<16x1xf32>
    %cst_21 = arith.constant dense<0.000000e+00> : vector<16x32xf32>
    %74 = tpu.matmul %70, %63, %cst_21 {dimension_numbers = #tpu.dot_dimension_numbers<[1], [0], [0], [1], [0, 0, 1, 1], [], []>} : vector<16x16xbf16>, vector<16x32xbf16>, vector<16x32xf32> -> vector<16x32xf32>
    %75 = tpu.reciprocal %73 {approx = true} : vector<16x1xf32> -> vector<16x1xf32>
    %76 = vector.broadcast %75 : vector<16x1xf32> to vector<16x32xf32>
    %77 = arith.mulf %74, %76 : vector<16x32xf32>
    %78 = tpu.concatenate %26, %43, %60, %77 in 1 : vector<16x32xf32>, vector<16x32xf32>, vector<16x32xf32>, vector<16x32xf32> -> vector<16x128xf32>
    %79 = arith.truncf %78 : vector<16x128xf32> to vector<16x128xbf16>
    %c0_22 = arith.constant 0 : index
    %c0_23 = arith.constant 0 : index
    %80 = vector.load %arg7[%c0_22, %c0_23] : memref<16x128xf32, #tpu.memory_space<vmem>>, vector<16x128xf32>
    %c0_24 = arith.constant 0 : index
    %c0_25 = arith.constant 0 : index
    %81 = vector.load %arg4[%c0_24, %c0_25] : memref<128x128xbf16, #tpu.memory_space<vmem>>, vector<128x128xbf16>
    %cst_26 = arith.constant dense<0.000000e+00> : vector<16x128xf32>
    %82 = tpu.matmul %79, %81, %cst_26 {dimension_numbers = #tpu.dot_dimension_numbers<[1], [0], [0], [1], [0, 0, 1, 1], [], []>} : vector<16x128xbf16>, vector<128x128xbf16>, vector<16x128xf32> -> vector<16x128xf32>
    %83 = arith.addf %80, %82 : vector<16x128xf32>
    %c0_27 = arith.constant 0 : index
    %c0_28 = arith.constant 0 : index
    %84 = vector.load %arg7[%c0_27, %c0_28] : memref<16x128xf32, #tpu.memory_space<vmem>>, vector<16x128xf32>
    tpu.vector_store %arg7[%c0_27, %c0_28], %83 {strides = array<i32>} : memref<16x128xf32, #tpu.memory_space<vmem>>, vector<16x128xf32>,
    %c0_i32_29 = arith.constant 0 : i32
    %85 = arith.cmpi eq, %arg1, %c0_i32_29 : i32
    %86 = arith.extui %85 : i1 to i32
    %c0_i32_30 = arith.constant 0 : i32
    %87 = arith.cmpi ne, %86, %c0_i32_30 : i32
    scf.if %87 {
      %c0_31 = arith.constant 0 : index
      %c0_32 = arith.constant 0 : index
      %88 = vector.load %arg7[%c0_31, %c0_32] : memref<16x128xf32, #tpu.memory_space<vmem>>, vector<16x128xf32>
      %c0_33 = arith.constant 0 : index
      %c0_34 = arith.constant 0 : index
      %c0_35 = arith.constant 0 : index
      %89 = vector.load %arg6[%c0_33, %c0_34, %c0_35] : memref<1x16x128xf32, #tpu.memory_space<vmem>>, vector<1x16x128xf32>
      %90 = vector.shape_cast %89 : vector<1x16x128xf32> to vector<16x128xf32>
      %91 = vector.shape_cast %88 : vector<16x128xf32> to vector<1x16x128xf32>
      tpu.vector_store %arg6[%c0_33, %c0_34, %c0_35], %91 {strides = array<i32>} : memref<1x16x128xf32, #tpu.memory_space<vmem>>, vector<1x16x128xf32>,
    } else {
    }
    return
  }
  func.func @transform_0(%arg0: i32, %arg1: i32) -> (i32, i32, i32) {
    %c0_i32 = arith.constant 0 : i32
    %c0_i32_0 = arith.constant 0 : i32
    %c0_i32_1 = arith.constant 0 : i32
    return %arg0, %c0_i32, %c0_i32_0 : i32, i32, i32
  }
  func.func @transform_1(%arg0: i32, %arg1: i32) -> (i32, i32, i32) {
    %c0_i32 = arith.constant 0 : i32
    %c0_i32_0 = arith.constant 0 : i32
    %c0_i32_1 = arith.constant 0 : i32
    return %arg1, %c0_i32, %c0_i32_0 : i32, i32, i32
  }
  func.func @transform_2(%arg0: i32, %arg1: i32) -> (i32, i32) {
    %c0_i32 = arith.constant 0 : i32
    %c0_i32_0 = arith.constant 0 : i32
    return %arg1, %c0_i32 : i32, i32
  }
  func.func @transform_3(%arg0: i32, %arg1: i32) -> (i32, i32) {
    %c0_i32 = arith.constant 0 : i32
    %c0_i32_0 = arith.constant 0 : i32
    %c0_i32_1 = arith.constant 0 : i32
    return %c0_i32, %c0_i32_0 : i32, i32
  }
  func.func @transform_4(%arg0: i32, %arg1: i32) -> (i32, i32, i32) {
    %c0_i32 = arith.constant 0 : i32
    %c0_i32_0 = arith.constant 0 : i32
    %c0_i32_1 = arith.constant 0 : i32
    return %arg0, %c0_i32, %c0_i32_0 : i32, i32, i32
  }
}

</mosaic_0001>

<bundles_post_ra>
// kernel: tpu_custom_call.1
= control target key start
LH: loop header
LB: loop body
LE: loop exit
PB: predicated region body
PF: predicated region fallthrough
CT: control target
= control target key end

     0   :  { %s1806_s0 = inlined_call_operand.hbm [shape: f32[2,16,128], index: 0, kind: input, shape index: {}]   ;;  %s1807_s1 = inlined_call_operand.hbm [shape: bf16[1,128,384], index: 1, kind: input, shape index: {}]   ;;  %s1808_s2 = inlined_call_operand.hbm [shape: bf16[128,128], index: 2, kind: input, shape index: {}]   ;;  %s1809_s3 = inlined_call_operand.vmem [shape: f32[1,128], index: 3, kind: input, shape index: {}]   ;;  %s1810_s4 = inlined_call_operand.hbm [shape: f32[2,16,128], index: 4, kind: output, shape index: {}]  }
   0x1   :  { %1811 = sst [smem:[#allocation13_spill]] %s1807_s1 }
   0x2   :  { %1812 = sst [smem:[#allocation14_spill]] %s1808_s2 }
   0x3   :  { %9 = vsyncpa [#allocation4], 0 }
   0x4   :  { %11 = vsyncpa [#allocation4 + $0x1], 0 }
   0x5   :  { %12 = vsyncpa [#allocation7], 0 }
   0x6   :  { %13 = vsyncpa [#allocation5], 0 }
   0x7   :  { %15 = vsyncpa [#allocation5 + $0x1], 0  ;;  %s1588_s15 = smov 0   ;;  %s1590_s16 = smov 0  }
   0x8   :  { %s1592_s17 = smov 0   ;;  %s1594_s18 = smov 0  }
   0x9   :  { %s1596_s19 = smov 0   ;;  %s1598_s20 = smov 0  }
   0xa LB: > { %s1041_s21 = sadd.s32 4294967295, %s1548_s20   ;;  %s1042_s22 = sadd.s32 4294967294, %s1548_s20   ;;  %s1548_s20 = sphi %s1598_s20, %s21_s20   ;;  %s1544_s19 = sphi %s1596_s19, %s1826_s19   ;;  %s1540_s18 = sphi %s1594_s18, %s1825_s18   ;;  %s1536_s17 = sphi %s1592_s17, %s1824_s17   ;;  %s1532_s16 = sphi %s1590_s16, %s1823_s16   ;;  %s1528_s15 = sphi %s1588_s15, %s1822_s15  }
   0xb   : > { %p53_p0 = scmp.ne.s32.totalorder %s1532_s16, %s1528_s15  ;;  %p1622_p1 = scmp.eq.s32.totalorder %s1041_s21, 0 }
   0xc   : > { %p1626_p2 = scmp.eq.s32.totalorder %s1041_s21, 1  ;;  %p156_p3 = scmp.eq.s32.totalorder %s1042_s22, 1 }
   0xd   : > { %p1632_p4 = por %p1622_p1, %p53_p0  ;;  %p1043_p5 = scmp.ge.s32.totalorder %s1548_s20, 1 }
   0xe   : > { %p1637_p6 = por %p156_p3, %p53_p0  ;;  %p163_p7 = scmp.lt.s32.totalorder %s1548_s20, 3 }
   0xf   : > { %s1817_s1 = sld [smem:[#allocation13_spill]]  ;;  %s1550_s5 = smov [#allocation6]  }
  0x10   : > { %p1645_p8 = pnand %p1043_p5, %p163_p7  ;;  %s179_s6 = sshll.u32 %s1550_s5, 4  ;;  %s180_s6 = int_to_ptr.vmem [resolvable:$true] %s179_s6 }
  0x11   : > { %p1046_p11 = scmp.ge.s32.totalorder %s1548_s20, 2  ;;  %s1819_s2 = sld [smem:[#allocation14_spill]] }
  0x12   : > { %p1242_p9 = pneg %p1645_p8  ;;  %s1551_s10 = smov 192  }
  0x13   : > { %s1552_s11 = smov 12   ;;  %s1553_s12 = smov [#allocation8]  }
  0x14   : > { %p1243_p10 = pnand %p1242_p9, %p1622_p1  ;;  %s196_s13 = sshll.u32 %s1553_s12, 4  ;;  %s197_s13 = int_to_ptr.vmem [resolvable:$true] %s196_s13 }
  0x15   : > { %s177_s29 = sshll.u32 %s1817_s1, 4  ;;  %s1554_s14 = smov 64   ;;  %s178_s29 = int_to_ptr.hbm [resolvable:$true] %s177_s29 }
  0x16   : > { %1245 = dma.hbm_to_vmem [thread:$0]  (!%p1243_p10), %s178_s29, 3072, %s180_s6, [#allocation7], %s1551_s10, %s1551_s10, %s1552_s11  }
  0x17   : > { %s194_s9 = sshll.u32 %s1819_s2, 4  ;;  %s1555_s21 = smov 4   ;;  %s195_s9 = int_to_ptr.hbm [resolvable:$true] %s194_s9 }
  0x18   : > { %1248 = dma.hbm_to_vmem [thread:$0]  (!%p1243_p10), %s195_s9, 1024, %s197_s13, [#allocation7], %s1554_s14, %s1554_s14, %s1555_s21  }
  0x19   : > { %s33_s22 = sadd.s32 1, %s1544_s19  ;;  %s40_s27 = sadd.s32 1, %s1536_s17 }
  0x1a   : > { %p35_p12 = scmp.ge.s32.totalorder %s33_s22, 2  ;;  %p47_p13 = scmp.ne.s32.totalorder %s1536_s17, %s1532_s16 }
  0x1b   : > { %p48_p0 = scmp.eq.s32.totalorder %s1548_s20, 0  ;;  %p1259_p3 = scmp.lt.s32.totalorder %s1548_s20, 2 }
  0x1c   : > { %s1828_s22 = smov (%p35_p12, %s33_s22), 0  ;;  %p1671_p7 = por %p1626_p2, %p47_p13 }
  0x1d   : > { %p1665_p5 = por %p48_p0, %p47_p13  ;;  %s37_s5 = ssub.s32 %s1544_s19, %s1828_s22 }
  0x1e   : > { %s213_s6 = sand.u32 1, %s1536_s17   ;;  %p38_p9 = scmp.eq.s32.totalorder %s37_s5, 0 }
  0x1f   : > { %s1047_s7 = sshll.u32 %s213_s6, 4  ;;  %s1196_s8 = sshll.u32 %s1544_s19, 4 }
  0x20   : > { %s1680_s9 = scalar_select %p38_p9, %s1536_s17, %s40_s27  }
  0x21   : > { %s222_s12 = scalar_lea.hbm %s1806_s0, %s1196_s8  ;;  %s217_s14 = scalar_lea.vmem [#allocation3], %s1047_s7 }
  0x22   : > { %s223_s13 = sshll.u32 %s222_s12, 4  ;;  %s225_s21 = sshll.u32 %s217_s14, 4  ;;  %s224_s13 = int_to_ptr.hbm [resolvable:$true] %s223_s13  ;;  %s226_s21 = int_to_ptr.vmem [resolvable:$true] %s225_s21 }
  0x23   : > { %p1250_p2 = pnand %p1259_p3, %p1665_p5  ;;  %s214_s24 = scalar_lea.sflag [#allocation4], %s213_s6 }
  0x24   : > { %s1556_s1 = smov 128   ;;  %s1557_s2 = smov 8  }
  0x25   : > { %1252 = dma.hbm_to_vmem [thread:$0]  (!%p1250_p2), %s224_s13, 256, %s226_s21, %s214_s24, %s1556_s1, %s1556_s1, %s1557_s2  }
  0x26   : > { %237 = sbr.rel (%p1645_p8) target bundleno = 1219 (0x4c3), region = 36  ;;  %s1692_s27 = sand.u32 (!%p1645_p8), 1, %s1532_s16  }
  0x27   : > { %s1051_s5 = sshll.u32 (!%p1645_p8), %s1692_s27, 4  ;;  %s240_s7 = scalar_lea.sflag (!%p1645_p8), [#allocation4], %s1692_s27 }
  0x28   : > { %s1698_s28 = scalar_lea.vmem (!%p1645_p8), [#allocation3], %s1051_s5 }
  0x2b   : > { %1515 = dma.done.wait (%p1632_p4), %s240_s7, 256  }
  0x2c   : > { %1517 = vsyncadd (%p1632_p4), %s240_s7, 4294967040 }
  0x2d   : > { %1519 = dma.done.wait (%p1622_p1), [#allocation7], 4096  }
  0x2e   : > { %1521 = vsyncadd (%p1622_p1), [#allocation7], 4294963200  ;;  %v1141_v0 = vld [vmem:[#allocation6 + $0xa8] sm:$0xf]  ;;  %v1219_v1 = vld [vmem:[#allocation6 + $0xb0] sm:$0xf0] }
  0x2f   : > { %v1218_v2 = vld [vmem:[#allocation6 + $0xac] sm:$0xf]  ;;  %v1142_v3 = vor.u32 %v1219_v1, %v1141_v0  ;;  %v1143_v4 = vld [vmem:[#allocation6 + $0xb4] sm:$0xf0]  ;;  %v1129_v5 = vld [vmem:[#allocation6 + $0x90] sm:$0xf] }
  0x30   : > { %v1216_v6 = vld [vmem:[#allocation6 + $0x98] sm:$0xf0]  ;;  %v1146_v7 = vor.u32 %v1218_v2, %v1143_v4  ;;  %v1215_v8 = vld [vmem:[#allocation6 + $0x94] sm:$0xf]  ;;  %v1131_v9 = vld [vmem:[#allocation6 + $0x9c] sm:$0xf0] }
  0x31   : > { %454 = vmatpush.bf16.msra.mxu0 %v1142_v3  ;;  %v1130_v10 = vor.u32 %v1216_v6, %v1129_v5  ;;  %v1134_v11 = vor.u32 %v1215_v8, %v1131_v9  ;;  %v1117_v12 = vld [vmem:[#allocation6 + $0x78] sm:$0xf]  ;;  %v1213_v13 = vld [vmem:[#allocation6 + $0x80] sm:$0xf0]  ;;  %v1212_v14 = vld [vmem:[#allocation6 + $0x7c] sm:$0xf] }
  0x32   : > { %468 = vmatpush.bf16.msra.mxu1 %v1146_v7  ;;  %v1119_v15 = vld [vmem:[#allocation6 + $0x84] sm:$0xf0]  ;;  %v1118_v16 = vor.u32 %v1213_v13, %v1117_v12  ;;  %v1105_v18 = vld [vmem:[#allocation6 + $0x60] sm:$0xf]  ;;  %v1210_v19 = vld [vmem:[#allocation6 + $0x68] sm:$0xf0] }
  0x33   : > { %v1122_v17 = vor.u32 %v1212_v14, %v1119_v15  ;;  %v1209_v20 = vld [vmem:[#allocation6 + $0x64] sm:$0xf]  ;;  %v1107_v21 = vld [vmem:[#allocation6 + $0x6c] sm:$0xf0]  ;;  %v1106_v22 = vor.u32 %v1210_v19, %v1105_v18  ;;  %v1093_v23 = vld [vmem:[#allocation6 + $0x48] sm:$0xf] }
  0x34   : > { %v1149_v24 = vld [vmem:[#allocation6 + $0xb0] sm:$0xf]  ;;  %v1220_v25 = vld [vmem:[#allocation6 + $0xb8] sm:$0xf0]  ;;  %v1110_v26 = vor.u32 %v1209_v20, %v1107_v21  ;;  %v1207_v27 = vld [vmem:[#allocation6 + $0x50] sm:$0xf0] }
  0x35   : > { %455 = vmatpush.bf16.msra.mxu0 %v1130_v10  ;;  %v1150_v28 = vor.u32 %v1220_v25, %v1149_v24  ;;  %v1137_v29 = vld [vmem:[#allocation6 + $0x98] sm:$0xf]  ;;  %v1217_v30 = vld [vmem:[#allocation6 + $0xa0] sm:$0xf0]  ;;  %v1206_v31 = vld [vmem:[#allocation6 + $0x4c] sm:$0xf]  ;;  %v1094_v34 = vor.u32 %v1207_v27, %v1093_v23 }
  0x36   : > { %469 = vmatpush.bf16.msra.mxu1 %v1134_v11  ;;  %v1095_v32 = vld [vmem:[#allocation6 + $0x54] sm:$0xf0]  ;;  %v1138_v33 = vor.u32 %v1217_v30, %v1137_v29  ;;  %v1125_v35 = vld [vmem:[#allocation6 + $0x80] sm:$0xf]  ;;  %v1214_v36 = vld [vmem:[#allocation6 + $0x88] sm:$0xf0] }
  0x37   : > { %482 = vmatpush.bf16.msra.mxu2 %v1150_v28  ;;  %v1098_v37 = vor.u32 %v1206_v31, %v1095_v32  ;;  %v1081_v38 = vld [vmem:[#allocation6 + $0x30] sm:$0xf]  ;;  %v1204_v39 = vld [vmem:[#allocation6 + $0x38] sm:$0xf0]  ;;  %v1203_v40 = vld [vmem:[#allocation6 + $0x34] sm:$0xf]  ;;  %v1126_v42 = vor.u32 %v1214_v36, %v1125_v35 }
  0x38   : > { %v1083_v41 = vld [vmem:[#allocation6 + $0x3c] sm:$0xf0]  ;;  %v1082_v43 = vor.u32 %v1204_v39, %v1081_v38  ;;  %v1113_v44 = vld [vmem:[#allocation6 + $0x68] sm:$0xf]  ;;  %v1211_v45 = vld [vmem:[#allocation6 + $0x70] sm:$0xf0] }
  0x39   : > { %456 = vmatpush.bf16.msra.mxu0 %v1118_v16  ;;  %v1086_v46 = vor.u32 %v1203_v40, %v1083_v41  ;;  %v1069_v47 = vld [vmem:[#allocation6 + $0x18] sm:$0xf]  ;;  %v1201_v48 = vld [vmem:[#allocation6 + $0x20] sm:$0xf0]  ;;  %v1200_v49 = vld [vmem:[#allocation6 + $0x1c] sm:$0xf]  ;;  %v1114_v51 = vor.u32 %v1211_v45, %v1113_v44 }
  0x3a   : > { %470 = vmatpush.bf16.msra.mxu1 %v1122_v17  ;;  %v1071_v50 = vld [vmem:[#allocation6 + $0x24] sm:$0xf0]  ;;  %v1070_v52 = vor.u32 %v1201_v48, %v1069_v47  ;;  %v1101_v53 = vld [vmem:[#allocation6 + $0x50] sm:$0xf]  ;;  %v1208_v54 = vld [vmem:[#allocation6 + $0x58] sm:$0xf0] }
  0x3b   : > { %483 = vmatpush.bf16.msra.mxu2 %v1138_v33  ;;  %v1074_v55 = vor.u32 %v1200_v49, %v1071_v50  ;;  %v1057_v56 = vld [vmem:[#allocation6] sm:$0xf]  ;;  %v1198_v57 = vld [vmem:[#allocation6 + $0x8] sm:$0xf0]  ;;  %v1197_v58 = vld [vmem:[#allocation6 + $0x4] sm:$0xf]  ;;  %v1102_v61 = vor.u32 %v1208_v54, %v1101_v53 }
  0x3c   : > { %v1059_v59 = vld [vmem:[#allocation6 + $0xc] sm:$0xf0]  ;;  %v1058_v62 = vor.u32 %v1198_v57, %v1057_v56  ;;  %v292_v63 = vld [vmem:[%s1698_s28 + $0x8] sm:$0xff]  ;;  %v1205_v1 = vld [vmem:[#allocation6 + $0x40] sm:$0xf0]  ;;  %vm508_vm0 = vcmask 261120  }
  0x3d   : > { %457 = vmatpush.bf16.msra.mxu0 %v1106_v22  ;;  %v291_v60 = vld [vmem:[%s1698_s28] sm:$0xff]  ;;  %v1089_v0 = vld [vmem:[#allocation6 + $0x38] sm:$0xf]  ;;  %v1062_v2 = vor.u32 %v1197_v58, %v1059_v59  ;;  %v1202_v6 = vld [vmem:[#allocation6 + $0x28] sm:$0xf0]  ;;  %s1558_s1 = smov 64  }
  0x3e   : > { %471 = vmatpush.bf16.msra.mxu1 %v1110_v26  ;;  %v293_v3 = vpack.c.bf16 %v292_v63, %v291_v60  ;;  %v1090_v4 = vor.u32 %v1205_v1, %v1089_v0  ;;  %v1077_v5 = vld [vmem:[#allocation6 + $0x20] sm:$0xf]  ;;  %v1065_v8 = vld [vmem:[#allocation6 + $0x8] sm:$0xf]  ;;  %v1199_v9 = vld [vmem:[#allocation6 + $0x10] sm:$0xf0] }
  0x3f   : > { %484 = vmatpush.bf16.msra.mxu2 %v1126_v42  ;;  %v1078_v7 = vor.u32 %v1202_v6, %v1077_v5  ;;  %v1066_v10 = vor.u32 %v1199_v9, %v1065_v8  ;;  %s1559_s2 = smov 96   ;;  %s1560_s23 = smov 32   ;;  %vm529_vm1 = vcmask 130048   ;;  %vm823_vm2 = vcmask 523264  }
  0x40   : > { %vm826_vm3 = vcmask 785408   ;;  %s1229_s6 = sshll.u32 %s1540_s18, 4  ;;  %s278_s8 = scalar_lea.vmem [#allocation9], %s1051_s5 }
  0x41   : > { %458 = vmatpush.bf16.msra.mxu0 %v1094_v34  ;;  %s933_s12 = scalar_lea.hbm %s1810_s4, %s1229_s6  ;;  %s934_s13 = sshll.u32 %s278_s8, 4  ;;  %s935_s13 = int_to_ptr.vmem [resolvable:$true] %s934_s13 }
  0x42   : > { %472 = vmatpush.bf16.msra.mxu1 %v1098_v37  ;;  %s936_s14 = sshll.u32 %s933_s12, 4  ;;  %s922_s21 = scalar_lea.sflag [#allocation5], %s1692_s27  ;;  %s937_s14 = int_to_ptr.hbm [resolvable:$true] %s936_s14 }
  0x43   : > { %485 = vmatpush.bf16.msra.mxu2 %v1114_v51  ;;  %s1476_s24 = sshra.s32 %s937_s14, 4  ;;  %s1482_s28 = scalar_lea.hbm %s1810_s4, 32  ;;  %s1477_s24 = int_to_ptr.hbm [resolvable:$true] %s1476_s24 }
  0x44   : > { %s1478_s18 = scalar_lea.hbm %s1477_s24, 16  ;;  %p1483_p10 = scmp.lt.s32.totalorder %s1477_s24, %s1810_s4 }
  0x45   : > { %459 = vmatpush.bf16.msra.mxu0 %v1082_v43  ;;  %p1479_p1 = scmp.ne.s32.totalorder %s1477_s24, %s1478_s18  ;;  %p1484_p12 = scmp.lt.s32.totalorder %s1482_s28, %s1478_s18 }
  0x46   : > { %473 = vmatpush.bf16.msra.mxu1 %v1086_v46 }
  0x47   : > { %486 = vmatpush.bf16.msra.mxu2 %v1102_v61  ;;  %p1480_p4 = pnand %p1479_p1, %p1671_p7  ;;  %p1485_p13 = por %p1484_p12, %p1483_p10 }
  0x49   : > { %460 = vmatpush.bf16.msra.mxu0 %v1070_v52  ;;  %p1481_p8 = pneg %p1480_p4 }
  0x4a   : > { %474 = vmatpush.bf16.msra.mxu1 %v1074_v55 }
  0x4b   : > { %487 = vmatpush.bf16.msra.mxu2 %v1090_v4  ;;  %p1486_p0 = pnand %p1485_p13, %p1481_p8 }
  0x4d   : > { %461 = vmatpush.bf16.msra.mxu0 %v1058_v62 }
  0x4e   : > { %475 = vmatpush.bf16.msra.mxu1 %v1062_v2 }
  0x4f   : > { %488 = vmatpush.bf16.msra.mxu2 %v1078_v7 }
  0x50   : > { %462 = vmatmul.bf16.vlgmr.msra.gmra.mxu0 %v293_v3 }
  0x51   : > { %476 = vmatmul.bf16.vlgmr.msra.gmra.mxu1 %v293_v3 }
  0x53   : > { %489 = vmatpush.bf16.msra.mxu2 %v1066_v10 }
  0x56   : > { %490 = vmatmul.bf16.vlgmr.msra.gmra.mxu2 %v293_v3 }
  0xcd   : > { %v463_v11 = vpop.f32.mrf.mxu0 }
  0xce   : > { %v477_v12 = vpop.f32.mrf.mxu1 }
  0xcf   : > { %v496_v13 = vpack.c.bf16 %v477_v12, %v463_v11 }
  0xd1   : > { %v505_v17 = vunpack.c.h.b16 %v496_v13  ;;  %v502_v22 = vunpack.c.l.b16 %v496_v13 }
  0xd5   : > { %v465_v14 = vpop.f32.mrf.mxu0 }
  0xd6   : > { %v479_v15 = vpop.f32.mrf.mxu1 }
  0xd7   : > { %v498_v16 = vpack.c.bf16 %v479_v15, %v465_v14 }
  0xd9   : > { %v506_v18 = vunpack.c.h.b16 %v498_v16  ;;  %v503_v21 = vunpack.c.l.b16 %v498_v16  ;;  %v491_v24 = vpop.f32.mrf.mxu2 }
  0xda   : > { %v497_v25 = vpack.c.bf16 %v491_v24, %v491_v24 }
  0xdb   : > { %v507_v19 = vpack.c.b16 %v506_v18, %v505_v17  ;;  %v504_v23 = vpack.c.b16 %v503_v21, %v502_v22 }
  0xdc   : > { %v556_v27 = vunpack.c.l.b16 %v497_v25 }
  0xdd   : > { %655 = vrot.lane.b32.xlu2 %v507_v19, %s1558_s1  ;;  %583 = vrot.lane.b32.xlu1 %v507_v19, %s1559_s2  ;;  %v513_v20 = vsel %vm508_vm0, %v507_v19, 0 }
  0xde   : > { %522 = vmatpush.bf16.xpose.msra.mxu3 %v513_v20 }
  0xe1   : > { %v493_v26 = vpop.f32.mrf.mxu2 }
  0xe2   : > { %v499_v28 = vpack.c.bf16 %v493_v26, %v493_v26 }
  0xe4   : > { %v557_v29 = vunpack.c.l.b16 %v499_v28 }
  0xe5   : > { %727 = vrot.lane.b32.xlu2 %v507_v19, %s1560_s23  ;;  %581 = vrot.lane.b32.xlu1 %v504_v23, %s1559_s2 }
  0xe6   : > { %1151 = vmatmul.msk.bf16.vlgmr.msra.gmra.mxu3 %vm508_vm0, %v504_v23  ;;  %v558_v30 = vpack.c.b16 %v557_v29, %v556_v27 }
  0xe8   : > { %570 = vmatpush.bf16.msrb.mxu3 %v558_v30 }
  0xed   : > { %725 = vrot.lane.b32.xlu1 %v504_v23, %s1560_s23 }
 0x137   : > { %v656_v31 = vpop.permute.xlu2 %655 }
 0x138   : > { %v661_v32 = vsel %vm508_vm0, %v656_v31, 0 }
 0x139   : > { %670 = vmatpush.bf16.xpose.msrb.mxu2 %v661_v32 }
 0x13f   : > { %v728_v50 = vpop.permute.xlu2 %727 }
 0x140   : > { %v733_v52 = vsel %vm508_vm0, %v728_v50, 0 }
 0x14f   : > { %v584_v33 = vpop.permute.xlu1 %583 }
 0x150   : > { %v589_v34 = vsel %vm508_vm0, %v584_v33, 0 }
 0x151   : > { %598 = vmatpush.bf16.xpose.msra.mxu3 %v589_v34 }
 0x157   : > { %v582_v54 = vpop.permute.xlu1 %581 }
 0x15f   : > { %v726_v55 = vpop.permute.xlu1 %725 }
 0x169   : > { %v524_v35 = vpop.f32.mrf.mxu3 }
 0x16a   : > { %v530_v36 = vsel %vm529_vm1, %v524_v35, -inf }
 0x16b   : > { %531 = vmax.xlane.f32.xlu0 %v530_v36 }
 0x171   : > { %v526_v37 = vpop.f32.mrf.mxu3 }
 0x172   : > { %v533_v38 = vsel %vm529_vm1, %v526_v37, -inf }
 0x173   : > { %534 = vmax.xlane.f32.xlu0 %v533_v38 }
 0x187   : > { %653 = vrot.lane.b32.xlu0 %v504_v23, %s1558_s1 }
 0x1de   : > { %v532_v39 = vpop.xlane.xlu0 %531 }
 0x1df   : > { %v536_v41 = vsub.f32 %v524_v35, %v532_v39 }
 0x1e6   : > { %v535_v40 = vpop.xlane.xlu0 %534 }
 0x1e7   : > { %v537_v42 = vsub.f32 %v526_v37, %v535_v40 }
 0x1e9   : > { %v538_v43 = vpack.c.bf16 %v537_v42, %v536_v41 }
 0x1eb   : > { %v539_v44 = vunpack.c.l.bf16 %v538_v43  ;;  %v540_v45 = vunpack.c.h.bf16 %v538_v43 }
 0x1ed   : > { %v541_v46 = vmul.f32 1.442695, %v539_v44  ;;  %v543_v47 = vmul.f32 1.442695, %v540_v45 }
 0x1ef   : > { %1340 = vpow2.f32 %v541_v46 }
 0x1f0   : > { %1342 = vpow2.f32 %v543_v47 }
 0x1f5   : > { %v1341_v48 = vpop.eup %1340 }
 0x1f6   : > { %v1343_v49 = vpop.eup %1342 }
 0x1f7   : > { %v1722_v51 = vpack.c.bf16 %v1343_v49, %v1341_v48 }
 0x1f9   : > { %1152 = vmatmul.msk.bf16.vlgmr.msrb.gmra.mxu3 %vm529_vm1, %v1722_v51  ;;  %v654_v53 = vpop.permute.xlu0 %653 }
 0x1fa   : > { %742 = vmatpush.bf16.xpose.msrb.mxu3 %v733_v52  ;;  %1155 = vmatmul.msk.bf16.vlgmr.msrb.gmra.mxu2 %vm508_vm0, %v654_v53 }
 0x209   : > { %1153 = vmatmul.msk.bf16.vlgmr.msra.gmra.mxu3 %vm508_vm0, %v582_v54 }
 0x219   : > { %1157 = vmatmul.msk.bf16.vlgmr.msrb.gmra.mxu3 %vm508_vm0, %v726_v55 }
 0x27c   : > { %v1730_v56 = vpop.f32.mrf.mxu3 }
 0x27d   : > { %v672_v57 = vpop.f32.mrf.mxu2 }
 0x27e   : > { %v677_v58 = vsel %vm529_vm1, %v672_v57, -inf }
 0x27f   : > { %678 = vmax.xlane.f32.xlu0 %v677_v58 }
 0x284   : > { %v1733_v59 = vpop.f32.mrf.mxu3 }
 0x285   : > { %v674_v60 = vpop.f32.mrf.mxu2 }
 0x286   : > { %v680_v61 = vsel %vm529_vm1, %v674_v60, -inf }
 0x287   : > { %681 = vmax.xlane.f32.xlu2 %v680_v61  ;;  %v546_v61 = vunpack.c.l.bf16 %v1722_v51 }
 0x28c   : > { %v600_v62 = vpop.f32.mrf.mxu3 }
 0x28d   : > { %v605_v63 = vsel %vm529_vm1, %v600_v62, -inf }
 0x28f   : > { %606 = vmax.xlane.f32.xlu2 %v605_v63  ;;  %v548_v63 = vsel %vm529_vm1, %v546_v61, 0.0 }
 0x293   : > { %701 = vrot.lane.b32.xlu0 %v558_v30, %s1558_s1 }
 0x294   : > { %v602_v0 = vpop.f32.mrf.mxu3 }
 0x295   : > { %v608_v1 = vsel %vm529_vm1, %v602_v0, -inf }
 0x296   : > { %609 = vmax.xlane.f32.xlu1 %v608_v1 }
 0x29c   : > { %v744_v2 = vpop.f32.mrf.mxu3 }
 0x29d   : > { %v749_v3 = vsel %vm529_vm1, %v744_v2, -inf }
 0x29e   : > { %750 = vmax.xlane.f32.xlu1 %v749_v3 }
 0x2a4   : > { %v746_v4 = vpop.f32.mrf.mxu3 }
 0x2a5   : > { %v752_v5 = vsel %vm529_vm1, %v746_v4, -inf }
 0x2a6   : > { %753 = vmax.xlane.f32.xlu1 %v752_v5 }
 0x2a7   : > { %629 = vrot.lane.b32.xlu2 %v558_v30, %s1559_s2 }
 0x2bf   : > { %773 = vrot.lane.b32.xlu1 %v558_v30, %s1560_s23 }
 0x2f2   : > { %v679_v6 = vpop.xlane.xlu0 %678 }
 0x2f3   : > { %v683_v8 = vsub.f32 %v672_v57, %v679_v6 }
 0x2fa   : > { %v682_v7 = vpop.xlane.xlu2 %681 }
 0x2fb   : > { %v684_v9 = vsub.f32 %v674_v60, %v682_v7  ;;  %v547_v60 = vunpack.c.h.bf16 %v1722_v51 }
 0x2fd   : > { %v685_v10 = vpack.c.bf16 %v684_v9, %v683_v8 }
 0x2ff   : > { %v686_v11 = vunpack.c.l.bf16 %v685_v10  ;;  %v687_v12 = vunpack.c.h.bf16 %v685_v10 }
 0x301   : > { %v688_v13 = vmul.f32 1.442695, %v686_v11  ;;  %v690_v14 = vmul.f32 1.442695, %v687_v12 }
 0x302   : > { %v607_v15 = vpop.xlane.xlu2 %606 }
 0x303   : > { %1344 = vpow2.f32 %v688_v13  ;;  %v611_v20 = vsub.f32 %v600_v62, %v607_v15  ;;  %v551_v62 = vsel %vm529_vm1, %v547_v60, 0.0 }
 0x304   : > { %1346 = vpow2.f32 %v690_v14 }
 0x305   : > { %v702_v16 = vpop.permute.xlu0 %701 }
 0x306   : > { %714 = vmatpush.bf16.msra.mxu2 %v702_v16 }
 0x309   : > { %v1345_v17 = vpop.eup %1344  ;;  %v610_v18 = vpop.xlane.xlu1 %609 }
 0x30a   : > { %v1347_v19 = vpop.eup %1346  ;;  %v612_v21 = vsub.f32 %v602_v0, %v610_v18  ;;  %v630_v22 = vpop.permute.xlu2 %629 }
 0x30b   : > { %642 = vmatpush.bf16.msrb.mxu0 %v630_v22  ;;  %v692_v23 = vpack.c.bf16 %v1347_v19, %v1345_v17 }
 0x30c   : > { %v613_v24 = vpack.c.bf16 %v612_v21, %v611_v20 }
 0x30d   : > { %1156 = vmatmul.msk.bf16.vlgmr.msra.gmra.mxu2 %vm529_vm1, %v692_v23  ;;  %v694_v25 = vunpack.c.h.bf16 %v692_v23  ;;  %v693_v26 = vunpack.c.l.bf16 %v692_v23 }
 0x30e   : > { %v614_v27 = vunpack.c.l.bf16 %v613_v24  ;;  %v615_v28 = vunpack.c.h.bf16 %v613_v24 }
 0x30f   : > { %v698_v29 = vsel %vm529_vm1, %v694_v25, 0.0  ;;  %v695_v30 = vsel %vm529_vm1, %v693_v26, 0.0  ;;  %v1228_v26 = vld [vmem:[#allocation8 + $0x38] sm:$0xff] }
 0x310   : > { %v616_v31 = vmul.f32 1.442695, %v614_v27  ;;  %v618_v32 = vmul.f32 1.442695, %v615_v28  ;;  %699 = vadd.xlane.f32.xlu2 %v698_v29  ;;  %696 = vadd.xlane.f32.xlu1 %v695_v30  ;;  %v1227_v27 = vld [vmem:[#allocation8 + $0x30] sm:$0xff]  ;;  %v1226_v28 = vld [vmem:[#allocation8 + $0x28] sm:$0xff] }
 0x311   : > { %v751_v33 = vpop.xlane.xlu1 %750  ;;  %896 = vmatpush.bf16.msrb.mxu1 %v1228_v26  ;;  %v1225_v29 = vld [vmem:[#allocation8 + $0x20] sm:$0xff]  ;;  %v1224_v30 = vld [vmem:[#allocation8 + $0x18] sm:$0xff] }
 0x312   : > { %1348 = vpow2.f32 %v616_v31  ;;  %v755_v37 = vsub.f32 %v744_v2, %v751_v33  ;;  %v1223_v31 = vld [vmem:[#allocation8 + $0x10] sm:$0xff]  ;;  %v1221_v33 = vld [vmem:[#allocation8] sm:$0xff] }
 0x313   : > { %1350 = vpow2.f32 %v618_v32  ;;  %v1222_v32 = vld [vmem:[#allocation8 + $0x8] sm:$0xff] }
 0x315   : > { %897 = vmatpush.bf16.msrb.mxu1 %v1227_v27 }
 0x318   : > { %v1349_v34 = vpop.eup %1348 }
 0x319   : > { %v1351_v35 = vpop.eup %1350  ;;  %v754_v36 = vpop.xlane.xlu1 %753  ;;  %898 = vmatpush.bf16.msrb.mxu1 %v1226_v28 }
 0x31a   : > { %v756_v38 = vsub.f32 %v746_v4, %v754_v36  ;;  %v620_v39 = vpack.c.bf16 %v1351_v35, %v1349_v34 }
 0x31c   : > { %v757_v40 = vpack.c.bf16 %v756_v38, %v755_v37  ;;  %1154 = vmatmul.msk.bf16.vlgmr.msrb.gmra.mxu0 %vm529_vm1, %v620_v39  ;;  %v622_v41 = vunpack.c.h.bf16 %v620_v39  ;;  %v621_v42 = vunpack.c.l.bf16 %v620_v39 }
 0x31d   : > { %899 = vmatpush.bf16.msrb.mxu1 %v1225_v29 }
 0x31e   : > { %v758_v43 = vunpack.c.l.bf16 %v757_v40  ;;  %v759_v44 = vunpack.c.h.bf16 %v757_v40  ;;  %v626_v45 = vsel %vm529_vm1, %v622_v41, 0.0  ;;  %v623_v46 = vsel %vm529_vm1, %v621_v42, 0.0 }
 0x31f   : > { %627 = vadd.xlane.f32.xlu0 %v626_v45  ;;  %624 = vadd.xlane.f32.xlu2 %v623_v46 }
 0x320   : > { %v760_v47 = vmul.f32 1.442695, %v758_v43  ;;  %v762_v48 = vmul.f32 1.442695, %v759_v44 }
 0x321   : > { %900 = vmatpush.bf16.msrb.mxu1 %v1224_v30 }
 0x322   : > { %1352 = vpow2.f32 %v760_v47 }
 0x323   : > { %1354 = vpow2.f32 %v762_v48 }
 0x325   : > { %901 = vmatpush.bf16.msrb.mxu1 %v1223_v31 }
 0x328   : > { %v1353_v49 = vpop.eup %1352 }
 0x329   : > { %v1355_v50 = vpop.eup %1354  ;;  %902 = vmatpush.bf16.msrb.mxu1 %v1222_v32 }
 0x32a   : > { %v764_v52 = vpack.c.bf16 %v1355_v50, %v1353_v49 }
 0x32c   : > { %v766_v53 = vunpack.c.h.bf16 %v764_v52  ;;  %v765_v54 = vunpack.c.l.bf16 %v764_v52 }
 0x32d   : > { %903 = vmatpush.bf16.msrb.mxu1 %v1221_v33 }
 0x32e   : > { %v770_v55 = vsel %vm529_vm1, %v766_v53, 0.0  ;;  %v767_v57 = vsel %vm529_vm1, %v765_v54, 0.0 }
 0x32f   : > { %771 = vadd.xlane.f32.xlu0 %v770_v55  ;;  %768 = vadd.xlane.f32.xlu2 %v767_v57 }
 0x331   : > { %v774_v58 = vpop.permute.xlu1 %773 }
 0x332   : > { %786 = vmatpush.bf16.msra.mxu0 %v774_v58 }
 0x335   : > { %1158 = vmatmul.msk.bf16.vlgmr.msra.gmra.mxu0 %vm529_vm1, %v764_v52 }
 0x337   : > { %552 = vadd.xlane.f32.xlu0 %v551_v62  ;;  %549 = vadd.xlane.f32.xlu2 %v548_v63 }
 0x383   : > { %v697_v0 = vpop.xlane.xlu1 %696  ;;  %v700_v1 = vpop.xlane.xlu2 %699 }
 0x384   : > { %1356 = vrcp.f32 %v697_v0 }
 0x385   : > { %1358 = vrcp.f32 %v700_v1 }
 0x38a   : > { %v1357_v4 = vpop.eup %1356 }
 0x38b   : > { %v1359_v5 = vpop.eup %1358 }
 0x390   : > { %v716_v2 = vpop.f32.mrf.mxu2 }
 0x391   : > { %v723_v8 = vmul.f32 %v1357_v4, %v716_v2 }
 0x392   : > { %v625_v3 = vpop.xlane.xlu2 %624  ;;  %v628_v6 = vpop.xlane.xlu0 %627 }
 0x393   : > { %1360 = vrcp.f32 %v625_v3 }
 0x394   : > { %1362 = vrcp.f32 %v628_v6 }
 0x398   : > { %v718_v7 = vpop.f32.mrf.mxu2 }
 0x399   : > { %v644_v51 = vpop.f32.mrf.mxu0  ;;  %v724_v9 = vmul.f32 %v1359_v5, %v718_v7  ;;  %v1361_v11 = vpop.eup %1360 }
 0x39a   : > { %v1363_v12 = vpop.eup %1362  ;;  %v651_v14 = vmul.f32 %v1361_v11, %v644_v51 }
 0x39b   : > { %v1329_v10 = vpack.i.bf16 %v724_v9, %v723_v8 }
 0x39d   : > { %1330 = vrot.lane.b32.xlu2 %v1329_v10, %s1558_s1 }
 0x3a1   : > { %v646_v13 = vpop.f32.mrf.mxu0 }
 0x3a2   : > { %v652_v15 = vmul.f32 %v1363_v12, %v646_v13  ;;  %v772_v17 = vpop.xlane.xlu0 %771  ;;  %v769_v18 = vpop.xlane.xlu2 %768 }
 0x3a3   : > { %1364 = vrcp.f32 %v772_v17 }
 0x3a4   : > { %v1324_v16 = vpack.i.bf16 %v652_v15, %v651_v14  ;;  %1366 = vrcp.f32 %v769_v18 }
 0x3a6   : > { %1325 = vrot.lane.b32.xlu1 %v1324_v16, %s1560_s23 }
 0x3a9   : > { %v1365_v20 = vpop.eup %1364 }
 0x3aa   : > { %v1367_v21 = vpop.eup %1366  ;;  %v553_v34 = vpop.xlane.xlu0 %552 }
 0x3ab   : > { %v550_v35 = vpop.xlane.xlu2 %549  ;;  %1368 = vrcp.f32 %v553_v34 }
 0x3ac   : > { %1370 = vrcp.f32 %v550_v35 }
 0x3b1   : > { %v1369_v37 = vpop.eup %1368 }
 0x3b2   : > { %v788_v19 = vpop.f32.mrf.mxu0  ;;  %v1371_v38 = vpop.eup %1370  ;;  %v580_v41 = vmul.f32 %v1369_v37, %v1733_v59 }
 0x3b3   : > { %v795_v23 = vmul.f32 %v1367_v21, %v788_v19  ;;  %v579_v42 = vmul.f32 %v1371_v38, %v1730_v56  ;;  %v1339_v56 = vld [vmem:[%s1809_s3] ss:$0 sm:$0xff] }
 0x3ba   : > { %v790_v22 = vpop.f32.mrf.mxu0 }
 0x3bb   : > { %v796_v24 = vmul.f32 %v1365_v20, %v790_v22 }
 0x3bd   : > { %v1334_v25 = vpack.i.bf16 %v796_v24, %v795_v23 }
 0x3bf   : > { %1335 = vrot.lane.b32.xlu0 %v1334_v25, %s1559_s2 }
 0x3f7   : > { %v1331_v43 = vpop.permute.xlu2 %1330 }
 0x3f8   : > { %v1333_v46 = vunpack.i.h.bf16 %v1331_v43  ;;  %v1332_v47 = vunpack.i.l.bf16 %v1331_v43 }
 0x418   : > { %v1326_v36 = vpop.permute.xlu1 %1325 }
 0x419   : > { %v1328_v39 = vunpack.i.h.bf16 %v1326_v36  ;;  %v1327_v40 = vunpack.i.l.bf16 %v1326_v36 }
 0x41b   : > { %v822_v44 = vsel %vm508_vm0, %v580_v41, %v1328_v39  ;;  %v821_v45 = vsel %vm508_vm0, %v579_v42, %v1327_v40 }
 0x41c   : > { %v824_v52 = vsel %vm823_vm2, %v821_v45, %v1332_v47  ;;  %v825_v53 = vsel %vm823_vm2, %v822_v44, %v1333_v46 }
 0x431   : > { %v1336_v48 = vpop.permute.xlu0 %1335 }
 0x432   : > { %v1338_v49 = vunpack.i.h.bf16 %v1336_v48  ;;  %v1337_v50 = vunpack.i.l.bf16 %v1336_v48 }
 0x434   : > { %v827_v54 = vsel %vm826_vm3, %v824_v52, %v1337_v50  ;;  %v828_v59 = vsel %vm826_vm3, %v825_v53, %v1338_v49 }
 0x435   : > { %v829_v55 = vpack.c.bf16 %v828_v59, %v827_v54 }
 0x437   : > { %904 = vmatmul.bf16.vlgmr.msrb.gmra.mxu1 %v829_v55 }
 0x4b4   : > { %v905_v57 = vpop.f32.mrf.mxu1 }
 0x4b5   : > { %v910_v58 = vadd.f32 %v1339_v56, %v905_v57 }
 0x4b7   : > { %919 = vst [vmem:[%s278_s8] sm:$0xff] %v910_v58 }
 0x4bc   : > { %v907_v60 = vpop.f32.mrf.mxu1 }
 0x4bd   : > { %v911_v61 = vadd.f32 %v1339_v56, %v907_v60 }
 0x4bf   : > { %920 = vst [vmem:[%s278_s8 + $0x8] sm:$0xff] %v911_v61 }
 0x4c0   : > { %1489 = shalt.err (!%p1486_p0)
}
 0x4c1   : > { %s1561_s27 = smov 128   ;;  %s1562_s23 = smov 8  }
 0x4c2   : > { %1240 = dma.vmem_to_hbm [thread:$0]  (%p1671_p7), %s935_s13, 256, %s937_s14, %s922_s21, %s1561_s27, %s1561_s27, %s1562_s23  }
 0x4c3 PF: > { %s951_s25 = sand.u32 1, %s1528_s15   ;;  %p1254_p3 = pnand %p1046_p11, %p1637_p6 }
 0x4c4   : > { %s952_s30 = scalar_lea.sflag [#allocation5], %s951_s25 }
 0x4c5   : > { %p1255_p5 = pneg %p1254_p3 }
 0x4c7   : > { %1523 = dma.done.wait (%p1255_p5), %s952_s30, 256  }
 0x4c8   : > { %1525 = vsyncadd (%p1255_p5), %s952_s30, 4294967040  ;;  %s21_s20 = sadd.s32 1, %s1548_s20   ;;  %s1822_s15 = smov %s1532_s16 }
 0x4c9   : > { %p18_p9 = scmp.ge.s32.totalorder %s21_s20, 4   ;;  %s1823_s16 = smov %s1536_s17 }
 0x4ca   : > { %s1824_s17 = smov %s1680_s9  ;;  %s1825_s18 = smov %s1544_s19 }
 0x4cb   : > { %s1826_s19 = smov %s1828_s22  ;;  %20 = sbr.rel (!%p18_p9) target bundleno = 10 (0xa), region = 99 }
 0x4d0   :  { %958 = vsyncpa [#allocation4], 1 }
 0x4d1   :  { %960 = vsyncpa [#allocation4 + $0x1], 1 }
 0x4d2   :  { %961 = vsyncpa [#allocation7], 1 }
 0x4d3   :  { %962 = vsyncpa [#allocation5], 1 }
 0x4d4   :  { %964 = vsyncpa [#allocation5 + $0x1], 1 }

</bundles_post_ra>
